<compile_context>
chip_gen: v6e
topology: v6e:2x2x1
jax: 0.10.0
libtpu: 0.0.40
codegen_flags: <defaults>
</compile_context>

<pallas_src>
import math

import jax
import jax.numpy as jnp
from jax import lax
from jax.experimental import pallas as pl
from jax.experimental.pallas import tpu as pltpu


def _dpk_kernel_single_k(amp_ref, bias_ref, x_ref, z_ref, o_ref):
    # Whole contraction fits one K tile: no accumulator carry, fused epilogue.
    acc = lax.dot_general(
        x_ref[...],
        z_ref[...],
        dimension_numbers=(((1,), (1,)), ((), ())),   # X @ Z.T, no transpose
        preferred_element_type=jnp.float32,
    )
    o_ref[...] = amp_ref[0] * acc + bias_ref[0]


def _dpk_kernel_multi_k(amp_ref, bias_ref, x_ref, z_ref, o_ref):
    # o_ref (f32) is VMEM-resident across the K axis (its index_map ignores k),
    # so accumulate into it directly -- no scratch buffer.
    k = pl.program_id(2)

    @pl.when(k == 0)
    def _():
        o_ref[...] = jnp.zeros_like(o_ref)

    o_ref[...] += lax.dot_general(
        x_ref[...],
        z_ref[...],
        dimension_numbers=(((1,), (1,)), ((), ())),
        preferred_element_type=jnp.float32,
    )

    @pl.when(k == pl.num_programs(2) - 1)
    def _():
        o_ref[...] = amp_ref[0] * o_ref[...] + bias_ref[0]


def _round_up(x, m):
    return ((x + m - 1) // m) * m


def dot_product_kernel_forward(X, Z, amplitude_scale_, sigma_zero_, *,
                               tm=512, tn=512, tk=512):
    """Pallas implementation of DotProductKernel.forward.

    X: (N, D), Z: (M, D).  amplitude_scale_, sigma_zero_ are the log-space
    scalar parameters (as in the nn.Parameter).  Returns (N, M) float32.
    """
    N, D = X.shape
    M, Dz = Z.shape
    assert D == Dz, "feature dims must match"

    # Keep bf16 inputs on the native MXU path; everything else runs f32.
    in_dtype = jnp.promote_types(X.dtype, Z.dtype)
    if in_dtype not in (jnp.bfloat16, jnp.float32):
        in_dtype = jnp.float32
    Xc = X.astype(in_dtype)
    Zc = Z.astype(in_dtype)
    sub_align = 16 if in_dtype == jnp.bfloat16 else 8

    # Parameter glue (exp of log-space params) stays in plain JAX; fold the
    # epilogue into a single multiply-add: amp*(K + sz) == amp*K + amp*sz.
    amp = jnp.exp(amplitude_scale_).astype(jnp.float32)
    sz = jnp.exp(sigma_zero_).astype(jnp.float32)
    bias = (amp * sz).reshape((1,))
    amp = amp.reshape((1,))

    # Balanced tile sizes: either the full dim (always a legal block shape) or
    # a near-even split rounded to the sublane/lane alignment.  Partial
    # trailing blocks on N / M are masked by Pallas on write; garbage in the
    # padded region of partial INPUT blocks only touches masked output
    # rows/cols, so no wrapper-side padding is needed on those axes.
    if N <= tm:
        tm_e = N
    else:
        tm_e = _round_up(pl.cdiv(N, pl.cdiv(N, tm)), sub_align)
    if M <= tn:
        tn_e = M
    else:
        tn_e = _round_up(pl.cdiv(M, pl.cdiv(M, tn)), 128)

    gi = pl.cdiv(N, tm_e)
    gj = pl.cdiv(M, tn_e)

    scalar_specs = [
        pl.BlockSpec(memory_space=pltpu.SMEM),   # amplitude scale
        pl.BlockSpec(memory_space=pltpu.SMEM),   # fused bias = amp * sigma_zero
    ]
    out_shape = jax.ShapeDtypeStruct((N, M), jnp.float32)

    if D <= tk:
        # Single contraction step: 2-D grid, no accumulator carry, no D pad
        # (a block dim equal to the full array dim is always legal).
        out = pl.pallas_call(
            _dpk_kernel_single_k,
            out_shape=out_shape,
            grid_spec=pltpu.PrefetchScalarGridSpec(
                num_scalar_prefetch=0,
                grid=(gi, gj),
                in_specs=scalar_specs + [
                    pl.BlockSpec((tm_e, D), lambda i, j: (i, 0)),   # X tile
                    pl.BlockSpec((tn_e, D), lambda i, j: (j, 0)),   # Z tile
                ],
                out_specs=pl.BlockSpec((tm_e, tn_e), lambda i, j: (i, j)),
            ),
            compiler_params=pltpu.CompilerParams(
                dimension_semantics=("parallel", "parallel"),
            ),
        )(amp, bias, Xc, Zc)
    else:
        # Multi-step contraction.  The K axis MUST be zero-padded: out-of-bounds
        # reads on a trailing K block would corrupt the accumulation.
        nk = pl.cdiv(D, tk)
        tk_e = _round_up(pl.cdiv(D, nk), 128)
        D_pad = pl.cdiv(D, tk_e) * tk_e
        if D_pad != D:
            Xc = jnp.pad(Xc, ((0, 0), (0, D_pad - D)))
            Zc = jnp.pad(Zc, ((0, 0), (0, D_pad - D)))

        out = pl.pallas_call(
            _dpk_kernel_multi_k,
            out_shape=out_shape,
            grid_spec=pltpu.PrefetchScalarGridSpec(
                num_scalar_prefetch=0,
                grid=(gi, gj, D_pad // tk_e),
                in_specs=scalar_specs + [
                    pl.BlockSpec((tm_e, tk_e), lambda i, j, k: (i, k)),   # X tile
                    pl.BlockSpec((tn_e, tk_e), lambda i, j, k: (j, k)),   # Z tile
                ],
                out_specs=pl.BlockSpec((tm_e, tn_e), lambda i, j, k: (i, j)),
            ),
            compiler_params=pltpu.CompilerParams(
                dimension_semantics=("parallel", "parallel", "arbitrary"),
            ),
        )(amp, bias, Xc, Zc)
    return out


# TODO(synk): forward_w_scale / detach are parameter-glue variants (same matmul
# kernel); only forward() is implemented here.


if __name__ == "__main__":
    # Deterministic parameter init, matching __init__(sigma_zero=1.0, amplitude_scale=1.0)
    amplitude_scale_ = jnp.asarray(math.log(1.0), dtype=jnp.float32)
    sigma_zero_ = jnp.asarray(math.log(1.0), dtype=jnp.float32)

    key = jax.random.PRNGKey(0)

    # 1) Small deterministic inputs: X (N, D), Z (M, D). Single tile, single K step.
    N, M, D = 16, 16, 32
    kx, kz = jax.random.split(key)
    X = jax.random.normal(kx, (N, D), dtype=jnp.float32)
    Z = jax.random.normal(kz, (M, D), dtype=jnp.float32)

    out = dot_product_kernel_forward(X, Z, amplitude_scale_, sigma_zero_)
    out = jax.block_until_ready(out)
    ref = jnp.exp(amplitude_scale_) * (X @ Z.T + jnp.exp(sigma_zero_))
    assert out.shape == (N, M)
    assert jnp.allclose(out, ref, atol=1e-4, rtol=1e-4)

    # 2) Non-tile-aligned N/M with small tiles to exercise multi-tile grid and
    #    masked partial trailing blocks on the N and M axes (no wrapper padding).
    N2, M2, D2 = 300, 200, 96
    kx2, kz2 = jax.random.split(jax.random.PRNGKey(1))
    X2 = jax.random.normal(kx2, (N2, D2), dtype=jnp.float32)
    Z2 = jax.random.normal(kz2, (M2, D2), dtype=jnp.float32)
    amp2_ = jnp.asarray(math.log(1.7), dtype=jnp.float32)
    sz2_ = jnp.asarray(math.log(0.3), dtype=jnp.float32)

    out2 = dot_product_kernel_forward(X2, Z2, amp2_, sz2_, tm=128, tn=128)
    out2 = jax.block_until_ready(out2)
    ref2 = jnp.exp(amp2_) * (X2 @ Z2.T + jnp.exp(sz2_))
    assert out2.shape == (N2, M2)
    assert jnp.allclose(out2, ref2, atol=1e-3, rtol=1e-4)

    # 3) Force the multi-K-step path (with zero-padded contraction axis) by
    #    using a small tk on a non-128-multiple D.
    N3, M3, D3 = 272, 320, 300
    kx3, kz3 = jax.random.split(jax.random.PRNGKey(2))
    X3 = jax.random.normal(kx3, (N3, D3), dtype=jnp.float32)
    Z3 = jax.random.normal(kz3, (M3, D3), dtype=jnp.float32)

    out3 = dot_product_kernel_forward(X3, Z3, amp2_, sz2_, tk=128)
    out3 = jax.block_until_ready(out3)
    ref3 = jnp.exp(amp2_) * (X3 @ Z3.T + jnp.exp(sz2_))
    assert out3.shape == (N3, M3)
    assert jnp.allclose(out3, ref3, atol=1e-3, rtol=1e-4)

    print("KERNEL_OK")
</pallas_src>

<mosaic_0001>
module attributes {stable_mosaic.version = 11 : i64} {
  func.func @_dpk_kernel_single_k(%arg0: i32, %arg1: i32, %arg2: memref<1xf32, #tpu.memory_space<smem>>, %arg3: memref<1xf32, #tpu.memory_space<smem>>, %arg4: memref<16x32xf32, #tpu.memory_space<vmem>>, %arg5: memref<16x32xf32, #tpu.memory_space<vmem>>, %arg6: memref<16x16xf32, #tpu.memory_space<vmem>>) attributes {dimension_semantics = [#tpu.dimension_semantics<parallel>, #tpu.dimension_semantics<parallel>], iteration_bounds = array<i64: 1, 1>, scalar_prefetch = 0 : i64, scratch_operands = 0 : i64, tpu.core_type = #tpu.core_type<tc>, window_params = [{transform_indices = @transform_0, window_bounds = array<i64: 1>}, {transform_indices = @transform_1, window_bounds = array<i64: 1>}, {transform_indices = @transform_2, window_bounds = array<i64: 16, 32>}, {transform_indices = @transform_3, window_bounds = array<i64: 16, 32>}, {transform_indices = @transform_4, window_bounds = array<i64: 16, 16>}]} {
    %c0 = arith.constant 0 : index
    %c0_0 = arith.constant 0 : index
    %0 = vector.load %arg4[%c0, %c0_0] : memref<16x32xf32, #tpu.memory_space<vmem>>, vector<16x32xf32>
    %c0_1 = arith.constant 0 : index
    %c0_2 = arith.constant 0 : index
    %1 = vector.load %arg5[%c0_1, %c0_2] : memref<16x32xf32, #tpu.memory_space<vmem>>, vector<16x32xf32>
    %cst = arith.constant dense<0.000000e+00> : vector<16x16xf32>
    %2 = tpu.matmul %0, %1, %cst {dimension_numbers = #tpu.dot_dimension_numbers<[1], [1], [0], [0], [0, 0, 1, 0], [], []>} : vector<16x32xf32>, vector<16x32xf32>, vector<16x16xf32> -> vector<16x16xf32>
    %c0_3 = arith.constant 0 : index
    %3 = memref.load %arg2[%c0_3] : memref<1xf32, #tpu.memory_space<smem>>
    %4 = vector.broadcast %3 : f32 to vector<16x16xf32>
    %5 = arith.mulf %4, %2 : vector<16x16xf32>
    %c0_4 = arith.constant 0 : index
    %6 = memref.load %arg3[%c0_4] : memref<1xf32, #tpu.memory_space<smem>>
    %7 = vector.broadcast %6 : f32 to vector<16x16xf32>
    %8 = arith.addf %5, %7 : vector<16x16xf32>
    %c0_5 = arith.constant 0 : index
    %c0_6 = arith.constant 0 : index
    %9 = vector.load %arg6[%c0_5, %c0_6] : memref<16x16xf32, #tpu.memory_space<vmem>>, vector<16x16xf32>
    tpu.vector_store %arg6[%c0_5, %c0_6], %8 {strides = array<i32>} : memref<16x16xf32, #tpu.memory_space<vmem>>, vector<16x16xf32>,
    return
  }
  func.func @transform_0(%arg0: i32, %arg1: i32) -> i32 {
    %c0_i32 = arith.constant 0 : i32
    %c0_i32_0 = arith.constant 0 : i32
    return %c0_i32 : i32
  }
  func.func @transform_1(%arg0: i32, %arg1: i32) -> i32 {
    %c0_i32 = arith.constant 0 : i32
    %c0_i32_0 = arith.constant 0 : i32
    return %c0_i32 : i32
  }
  func.func @transform_2(%arg0: i32, %arg1: i32) -> (i32, i32) {
    %c0_i32 = arith.constant 0 : i32
    %c0_i32_0 = arith.constant 0 : i32
    return %arg0, %c0_i32 : i32, i32
  }
  func.func @transform_3(%arg0: i32, %arg1: i32) -> (i32, i32) {
    %c0_i32 = arith.constant 0 : i32
    %c0_i32_0 = arith.constant 0 : i32
    return %arg1, %c0_i32 : i32, i32
  }
  func.func @transform_4(%arg0: i32, %arg1: i32) -> (i32, i32) {
    %c0_i32 = arith.constant 0 : i32
    return %arg0, %arg1 : i32, i32
  }
}

</mosaic_0001>

<bundles_post_ra>
// kernel: tpu_custom_call.1
= control target key start
LH: loop header
LB: loop body
LE: loop exit
PB: predicated region body
PF: predicated region fallthrough
CT: control target
= control target key end

     0   :  { %11 = vsyncpa [#allocation5], 0  ;;  %s309_s0 = inlined_call_operand.<no memory space> [shape: f32[1], index: 0, kind: input, shape index: {}]   ;;  %s310_s1 = inlined_call_operand.<no memory space> [shape: f32[1], index: 1, kind: input, shape index: {}]   ;;  %s311_s2 = inlined_call_operand.hbm [shape: f32[16,32], index: 2, kind: input, shape index: {}]   ;;  %s312_s3 = inlined_call_operand.hbm [shape: f32[16,32], index: 3, kind: input, shape index: {}]   ;;  %s313_s4 = inlined_call_operand.hbm [shape: f32[16,16], index: 4, kind: output, shape index: {}]  }
   0x1   :  { %12 = vsyncpa [#allocation8], 0 }
   0x2   :  { %13 = vsyncpa [#allocation6], 0  ;;  %s255_s15 = smov [#allocation4]  }
   0x3   :  { %s23_s16 = sshll.u32 %s255_s15, 4  ;;  %s24_s16 = int_to_ptr.vmem [resolvable:$true] %s23_s16 }
   0x4   :  { %s197_s17 = scalar_lea.vmem %s24_s16, 256  ;;  %p202_p1 = scmp.lt.s32.totalorder %s24_s16, %s24_s16 }
   0x5   :  { %p198_p0 = scmp.ne.s32.totalorder %s24_s16, %s197_s17  ;;  %p203_p2 = scmp.lt.s32.totalorder %s197_s17, %s197_s17 }
   0x7   :  { %p204_p3 = por %p203_p2, %p202_p1 }
   0x9   :  { %p205_p4 = pnand %p204_p3, %p198_p0 }
   0xb   :  { %208 = shalt.err (!%p205_p4)
}
   0xc   :  { %s256_s18 = smov 128   ;;  %s257_s19 = smov 8  }
   0xd   :  { %29 = dma.hbm_to_vmem [thread:$0]  %s311_s2, 256, %s24_s16, [#allocation5], %s256_s18, %s256_s18, %s257_s19  }
   0xe   :  { %s258_s22 = smov [#allocation7]  }
   0xf   :  { %s35_s23 = sshll.u32 %s258_s22, 4  ;;  %s36_s23 = int_to_ptr.vmem [resolvable:$true] %s35_s23 }
  0x10   :  { %s217_s24 = scalar_lea.vmem %s36_s23, 256  ;;  %p222_p6 = scmp.lt.s32.totalorder %s36_s23, %s36_s23 }
  0x11   :  { %p218_p5 = scmp.ne.s32.totalorder %s36_s23, %s217_s24  ;;  %p223_p7 = scmp.lt.s32.totalorder %s217_s24, %s217_s24 }
  0x13   :  { %p224_p8 = por %p223_p7, %p222_p6 }
  0x15   :  { %p225_p9 = pnand %p224_p8, %p218_p5 }
  0x17   :  { %228 = shalt.err (!%p225_p9)
}
  0x18   :  { %41 = dma.hbm_to_vmem [thread:$0]  %s312_s3, 256, %s36_s23, [#allocation8], %s256_s18, %s256_s18, %s257_s19  }
  0x19   :  { %249 = dma.done.wait [#allocation5], 256  }
  0x1a   :  { %250 = vsyncadd [#allocation5], 4294967040 }
  0x1b   :  { %251 = dma.done.wait [#allocation8], 256  }
  0x1c   :  { %252 = vsyncadd [#allocation8], 4294967040  ;;  %vm52_vm0 = vcmask 261120   ;;  %v51_v0 = vld [vmem:[#allocation7 + $0x8] sm:$0xff]  ;;  %v50_v1 = vld [vmem:[#allocation7] sm:$0xff]  ;;  %v141_v4 = vstv %s309_s0  ;;  %v145_v6 = vstv %s310_s1  ;;  %vm148_vm1 = vcmask 130048  }
  0x1d   :  { %v48_v2 = vld [vmem:[#allocation4] sm:$0xff]  ;;  %177 = vmatprep.subr.msk.mxu0 %vm52_vm0, %v51_v0  ;;  %v49_v3 = vld [vmem:[#allocation4 + $0x8] sm:$0xff]  ;;  %s259_s29 = smov [#allocation9]  }
  0x1e   :  { %181 = vmatprep.mubr.msk.f32.mxu0 %vm52_vm0, %v48_v2  ;;  %178 = vmatpush3.xpose.msk.msra.mxu0 %vm52_vm0, %v51_v0  ;;  %s156_s30 = sshll.u32 %s259_s29, 4  ;;  %s157_s30 = int_to_ptr.vmem [resolvable:$true] %s156_s30 }
  0x1f   :  { %179 = vmatprep.subr.msk.mxu0 %vm52_vm0, %v50_v1  ;;  %s229_s5 = scalar_lea.vmem %s157_s30, 256  ;;  %p234_p11 = scmp.lt.s32.totalorder %s157_s30, %s157_s30 }
  0x20   :  { %p230_p10 = scmp.ne.s32.totalorder %s157_s30, %s229_s5  ;;  %p235_p12 = scmp.lt.s32.totalorder %s229_s5, %s229_s5 }
  0x22   :  { %180 = vmatpush3.xpose.msk.msra.mxu0 %vm52_vm0, %v50_v1  ;;  %p236_p13 = por %p235_p12, %p234_p11 }
  0x24   :  { %p237_p0 = pnand %p236_p13, %p230_p10 }
  0x25   :  { %182 = vmatmul.mubr.msk.f32.vlgmr.msra.gmra.mxu0 %vm52_vm0, %v49_v3 }
  0xe5   :  { %v183_v5 = vpop.f32.mrf.mxu0 }
  0xe6   :  { %v143_v7 = vmul.f32 %v183_v5, %v141_v4 }
  0xe7   :  { %v131_v8 = vpop.f32.mrf.mxu0 }
  0xe8   :  { %v147_v9 = vadd.f32 %v145_v6, %v143_v7  ;;  %v142_v10 = vmul.f32 %v141_v4, %v131_v8 }
  0xea   :  { %v146_v11 = vadd.f32 %v145_v6, %v142_v10  ;;  %150 = vst.msk [vmem:[#allocation9 + $0x8] sm:$0xff] %vm148_vm1, %v147_v9 }
  0xec   :  { %149 = vst.msk [vmem:[#allocation9] sm:$0xff] %vm148_vm1, %v146_v11 }
  0xed   :  { %240 = shalt.err (!%p237_p0)
}
  0xee   :  { %162 = dma.vmem_to_hbm [thread:$0]  %s157_s30, 256, %s313_s4, [#allocation6], %s256_s18, %s256_s18, %s257_s19  }
  0xef   :  { %253 = dma.done.wait [#allocation6], 256  }
  0xf0   :  { %254 = vsyncadd [#allocation6], 4294967040 }
  0xf1   :  { %166 = vsyncpa [#allocation5], 1 }
  0xf2   :  { %167 = vsyncpa [#allocation8], 1 }
  0xf3   :  { %168 = vsyncpa [#allocation6], 1 }

</bundles_post_ra>
